<compile_context>
chip_gen: v6e
topology: v6e:2x2x1
jax: 0.10.0
libtpu: 0.0.40
codegen_flags: <defaults>
</compile_context>

<pallas_src>
import jax
import jax.numpy as jnp
from jax.experimental import pallas as pl
from jax.experimental.pallas import tpu as pltpu

PAD_H = 2  # rows appended at the end of the second-to-last (H) axis


def pad_kernel(x_ref, o_ref):
    # x_ref: (TR, H, W) tile;  o_ref: (TR, H + PAD_H, W) tile.
    h = x_ref.shape[1]
    # Two disjoint stores that cover the output tile exactly: bulk copy of the
    # input rows, then zero only the PAD_H trailing rows.
    o_ref[:, :h, :] = x_ref[...]
    o_ref[:, h:, :] = jnp.zeros(
        (o_ref.shape[0], o_ref.shape[1] - h, o_ref.shape[2]), o_ref.dtype
    )


def _vmem_budget_and_limit():
    """(tile budget bytes, vmem_limit_bytes), generation-aware.

    Budget covers the double-buffered (in + out) tile footprint: ~1/3 of
    per-core VMEM, capped at 32 MiB.  The scoped-VMEM limit is raised to at
    most 3/4 of physical (<= 48 MiB) so the compiler accepts the bigger tiles:
      v5e/v6e (128 MiB VMEM): budget 32 MiB, limit 48 MiB
      v7x     ( 64 MiB VMEM): budget ~21 MiB, limit 48 MiB
    """
    try:
        cap = int(pltpu.get_tpu_info().vmem_capacity_bytes)
    except Exception:
        cap = 64 << 20  # conservative fallback (v7x per-core VMEM)
    budget = min(cap // 3, 32 << 20)
    limit = min((cap * 3) // 4, 48 << 20)
    return budget, max(limit, budget)


def _choose_row_tile(rows, h, w, itemsize, budget_bytes):
    """Largest row tile whose double-buffered in+out footprint fits budget."""
    per_row = 2 * (2 * h + PAD_H) * w * itemsize  # 2x (pipeline) * (in + out)
    tr = max(1, min(rows, budget_bytes // max(per_row, 1)))
    # Guarantee >= 2 grid steps whenever possible so both v7x TensorCores run.
    if rows >= 2 and -(-rows // tr) < 2:
        tr = -(-rows // 2)
    return tr


def pad_forward(x):
    *lead, h, w = x.shape
    rows = 1
    for d in lead:
        rows *= d
    h_out = h + PAD_H

    # Merge only the major dims -> layout-free on TPU tiled HBM layouts.
    x3 = x.reshape(rows, h, w)

    budget, vmem_limit = _vmem_budget_and_limit()
    tr = _choose_row_tile(rows, h, w, jnp.dtype(x.dtype).itemsize, budget)
    grid = (-(-rows // tr),)  # ceil-div

    out3 = pl.pallas_call(
        pad_kernel,
        out_shape=jax.ShapeDtypeStruct((rows, h_out, w), x.dtype),
        grid_spec=pltpu.PrefetchScalarGridSpec(
            num_scalar_prefetch=0,
            grid=grid,
            in_specs=[pl.BlockSpec((tr, h, w), lambda i: (i, 0, 0))],
            out_specs=pl.BlockSpec((tr, h_out, w), lambda i: (i, 0, 0)),
        ),
        compiler_params=pltpu.CompilerParams(
            dimension_semantics=("parallel",),
            vmem_limit_bytes=int(vmem_limit),
        ),
    )(x3)

    return out3.reshape(*lead, h_out, w)


if __name__ == "__main__":
    key = jax.random.PRNGKey(0)
    x = jax.random.normal(key, (2, 4, 16, 16), dtype=jnp.float32)

    out = pad_forward(x)
    out = jax.block_until_ready(out)

    # Correctness check against pure-JAX reference of F.pad(x, [0, 0, 0, 2]).
    ref = jnp.pad(x, ((0, 0), (0, 0), (0, PAD_H), (0, 0)))
    assert out.shape == (2, 4, 16 + PAD_H, 16), out.shape
    assert out.dtype == x.dtype
    assert jnp.array_equal(out, ref), "mismatch vs reference pad"

    print("KERNEL_OK")
</pallas_src>

<mosaic_0001>
module attributes {stable_mosaic.version = 11 : i64} {
  func.func @pad_kernel(%arg0: i32, %arg1: memref<4x16x16xf32, #tpu.memory_space<vmem>>, %arg2: memref<4x18x16xf32, #tpu.memory_space<vmem>>) attributes {dimension_semantics = [#tpu.dimension_semantics<parallel>], iteration_bounds = array<i64: 2>, scalar_prefetch = 0 : i64, scratch_operands = 0 : i64, tpu.core_type = #tpu.core_type<tc>, window_params = [{transform_indices = @transform_0, window_bounds = array<i64: 4, 16, 16>}, {transform_indices = @transform_1, window_bounds = array<i64: 4, 18, 16>}]} {
    %c0 = arith.constant 0 : index
    %c0_0 = arith.constant 0 : index
    %c0_1 = arith.constant 0 : index
    %0 = vector.load %arg1[%c0, %c0_0, %c0_1] : memref<4x16x16xf32, #tpu.memory_space<vmem>>, vector<4x16x16xf32>
    %c0_2 = arith.constant 0 : index
    %c0_3 = arith.constant 0 : index
    %c0_4 = arith.constant 0 : index
    %1 = vector.load %arg2[%c0_2, %c0_3, %c0_4] : memref<4x18x16xf32, #tpu.memory_space<vmem>>, vector<4x16x16xf32>
    tpu.vector_store %arg2[%c0_2, %c0_3, %c0_4], %0 {strides = array<i32>} : memref<4x18x16xf32, #tpu.memory_space<vmem>>, vector<4x16x16xf32>,
    %cst = arith.constant 0.000000e+00 : f32
    %2 = vector.broadcast %cst : f32 to vector<4x2x16xf32>
    %c0_5 = arith.constant 0 : index
    %c16 = arith.constant 16 : index
    %c0_6 = arith.constant 0 : index
    %3 = vector.load %arg2[%c0_5, %c16, %c0_6] : memref<4x18x16xf32, #tpu.memory_space<vmem>>, vector<4x2x16xf32>
    tpu.vector_store %arg2[%c0_5, %c16, %c0_6], %2 {strides = array<i32>} : memref<4x18x16xf32, #tpu.memory_space<vmem>>, vector<4x2x16xf32>,
    return
  }
  func.func @transform_0(%arg0: i32) -> (i32, i32, i32) {
    %c0_i32 = arith.constant 0 : i32
    %c0_i32_0 = arith.constant 0 : i32
    %c0_i32_1 = arith.constant 0 : i32
    return %arg0, %c0_i32, %c0_i32_0 : i32, i32, i32
  }
  func.func @transform_1(%arg0: i32) -> (i32, i32, i32) {
    %c0_i32 = arith.constant 0 : i32
    %c0_i32_0 = arith.constant 0 : i32
    %c0_i32_1 = arith.constant 0 : i32
    return %arg0, %c0_i32, %c0_i32_0 : i32, i32, i32
  }
}

</mosaic_0001>

<bundles_post_ra>
// kernel: tpu_custom_call.1
= control target key start
LH: loop header
LB: loop body
LE: loop exit
PB: predicated region body
PF: predicated region fallthrough
CT: control target
= control target key end

     0   :  { %6 = vsyncpa [#allocation3], 0  ;;  %s482_s0 = inlined_call_operand.hbm [shape: f32[8,16,16], index: 0, kind: input, shape index: {}]   ;;  %s483_s1 = inlined_call_operand.vmem [shape: f32[8,18,16], index: 1, kind: output, shape index: {}]  }
   0x1   :  { %8 = vsyncpa [#allocation3 + $0x1], 0  ;;  %s370_s6 = smov 0   ;;  %s372_s7 = smov 0  }
   0x2   :  { %s374_s8 = smov 0   ;;  %s376_s9 = smov 0  }
   0x3 LB: > { %s233_s10 = sadd.s32 4294967295, %s354_s9   ;;  %s390_s11 = sadd.s32 1, %s354_s9   ;;  %s354_s9 = sphi %s376_s9, %s492_s9   ;;  %s350_s8 = sphi %s374_s8, %s491_s8   ;;  %s346_s7 = sphi %s372_s7, %s490_s7   ;;  %s342_s6 = sphi %s370_s6, %s489_s6  }
   0x4   : > { %s18_s12 = ssub.s32 %s354_s9, %s390_s11  ;;  %s21_s13 = sadd.s32 1, %s350_s8 }
   0x5   : > { %p19_p0 = scmp.eq.s32.totalorder %s18_s12, 0  ;;  %p28_p1 = scmp.ne.s32.totalorder %s350_s8, %s346_s7 }
   0x6   : > { %p29_p2 = scmp.eq.s32.totalorder %s354_s9, 0  ;;  %p34_p3 = scmp.ne.s32.totalorder %s346_s7, %s342_s6 }
   0x7   : > { %s400_s14 = scalar_select %p19_p0, %s350_s8, %s21_s13  }
   0x8   : > { %p30_p4 = por %p29_p2, %p28_p1  ;;  %p35_p5 = scmp.eq.s32.totalorder %s233_s10, 0 }
   0x9   : > { %p256_p6 = scmp.lt.s32.totalorder %s354_s9, 2  ;;  %s84_s16 = sand.u32 1, %s350_s8  }
   0xa   : > { %p405_p7 = por %p35_p5, %p34_p3  ;;  %s237_s17 = sshll.u32 %s84_s16, 6 }
   0xb   : > { %s248_s18 = sshll.u32 %s354_s9, 10  ;;  %s88_s22 = scalar_lea.vmem [#allocation2], %s237_s17 }
   0xc   : > { %s485_s15 = scalar_select %p405_p7, 1, 0 }
   0xd   : > { %s414_s21 = scalar_lea.hbm %s482_s0, %s248_s18  ;;  %s96_s23 = sshll.u32 %s88_s22, 4  ;;  %s416_s23 = int_to_ptr.vmem [resolvable:$true] %s96_s23 }
   0xe   : > { %p418_p8 = pnand %p256_p6, %p30_p4  ;;  %s423_s25 = scalar_lea.sflag [#allocation3], %s84_s16 }
   0xf   : > { %s292_s26 = scalar_lea.hbm %s414_s21, 1024  ;;  %s297_s29 = scalar_lea.hbm %s482_s0, 2048 }
  0x10   : > { %p293_p10 = scmp.ne.s32.totalorder %s414_s21, %s292_s26  ;;  %p294_p11 = pneg %p418_p8 }
  0x11   : > { %p298_p0 = scmp.lt.s32.totalorder %s414_s21, %s482_s0  ;;  %p299_p1 = scmp.lt.s32.totalorder %s297_s29, %s292_s26 }
  0x12   : > { %p295_p12 = pnand %p294_p11, %p293_p10 }
  0x13   : > { %p300_p2 = por %p299_p1, %p298_p0 }
  0x14   : > { %p296_p13 = pneg %p295_p12 }
  0x16   : > { %p301_p3 = pnand %p300_p2, %p296_p13 }
  0x18   : > { %304 = shalt.err (!%p301_p3)
}
  0x19   : > { %s305_s3 = scalar_lea.vmem %s416_s23, 1024  ;;  %s356_s4 = smov [#allocation2]  }
  0x1a   : > { %p306_p4 = scmp.ne.s32.totalorder %s416_s23, %s305_s3  ;;  %s310_s5 = sshll.u32 %s356_s4, 4  ;;  %s311_s5 = int_to_ptr.vmem [resolvable:$false] %s310_s5 }
  0x1b   : > { %s312_s6 = scalar_lea.vmem %s311_s5, 2048  ;;  %p313_p10 = scmp.lt.s32.totalorder %s416_s23, %s311_s5 }
  0x1c   : > { %p308_p5 = pnand %p306_p4, %p294_p11  ;;  %p314_p12 = scmp.lt.s32.totalorder %s312_s6, %s305_s3 }
  0x1e   : > { %p309_p6 = pneg %p308_p5  ;;  %p315_p9 = por %p314_p12, %p313_p10 }
  0x20   : > { %p316_p7 = pnand %p315_p9, %p309_p6 }
  0x22   : > { %319 = shalt.err (!%p316_p7)
}
  0x23   : > { %s357_s12 = smov 128   ;;  %s358_s13 = smov 8  }
  0x24   : > { %255 = dma.hbm_to_vmem [thread:$0]  (!%p418_p8), %s414_s21, 1024, %s416_s23, %s423_s25, %s357_s12, %s357_s12, %s358_s13  }
  0x25   : > { %p104_p11 = scmp.lt.s32.totalorder %s354_s9, 3  ;;  %p487_p13 = scmp.ge.s32.totalorder %s354_s9, 1 }
  0x27   : > { %p105_p0 = pnand %p487_p13, %p104_p11 }
  0x28   : > { %s110_s16 = sand.u32 (!%p105_p0), 1, %s346_s7   ;;  %p488_p7 = scmp.ne.s32.totalorder (!%p105_p0), %s485_s15, 0 }
  0x29   : > { %108 = sbr.rel (%p105_p0) target bundleno = 60 (0x3c), region = 24  ;;  %s242_s17 = sshll.u32 (!%p105_p0), %s110_s16, 6 }
  0x2a   : > { %s111_s18 = scalar_lea.sflag (!%p105_p0), [#allocation3], %s110_s16  ;;  %s114_s19 = scalar_lea.vmem (!%p105_p0), [#allocation2], %s242_s17 }
  0x2e   : > { %337 = dma.done.wait (%p488_p7), %s111_s18, 1024  }
  0x2f   : > { %339 = vsyncadd (%p488_p7), %s111_s18, 4294966272  ;;  %s243_s20 = sshll.u32 %s233_s10, 2  ;;  %vm150_vm0 = vcmask 130048   ;;  %vm159_vm1 = vcmask 123904   ;;  %v142_v0 = vld [vmem:[%s114_s19] sm:$0xff]  ;;  %v143_v1 = vld [vmem:[%s114_s19 + $0x8] sm:$0xff] }
  0x30   : > { %p136_p9 = scmp.lt.s32.totalorder %s243_s20, 7  ;;  %v144_v2 = vld [vmem:[%s114_s19 + $0x10] sm:$0xff]  ;;  %v359_v3 = vmov 0.0   ;;  %v145_v4 = vld [vmem:[%s114_s19 + $0x18] sm:$0xff]  ;;  %v146_v5 = vld [vmem:[%s114_s19 + $0x20] sm:$0xff] }
  0x31   : > { %v147_v6 = vld [vmem:[%s114_s19 + $0x28] sm:$0xff]  ;;  %v148_v7 = vld [vmem:[%s114_s19 + $0x30] sm:$0xff]  ;;  %v149_v8 = vld [vmem:[%s114_s19 + $0x38] sm:$0xff] }
  0x32   : > { %s494_s20 = smov (!%p136_p9, %s243_s20), 7 }
  0x33   : > { %s249_s21 = smul.u32 24, %s494_s20 }
  0x35   : > { %s140_s24 = scalar_lea.vmem %s483_s1, %s249_s21 }
  0x36   : > { %151 = vst.msk [vmem:[%s140_s24] sm:$0xff] %vm150_vm0, %v142_v0  ;;  %152 = vst.msk [vmem:[%s140_s24 + $0x8] sm:$0xff] %vm150_vm0, %v143_v1 }
  0x37   : > { %160 = vst.msk [vmem:[%s140_s24 + $0x10] sm:$0x3] %vm159_vm1, %v359_v3  ;;  %161 = vst.msk [vmem:[%s140_s24 + $0x28] sm:$0x3] %vm159_vm1, %v359_v3 }
  0x38   : > { %153 = vst.msk [vmem:[%s140_s24 + $0x18] sm:$0xff] %vm150_vm0, %v144_v2  ;;  %154 = vst.msk [vmem:[%s140_s24 + $0x20] sm:$0xff] %vm150_vm0, %v145_v4 }
  0x39   : > { %162 = vst.msk [vmem:[%s140_s24 + $0x40] sm:$0x3] %vm159_vm1, %v359_v3  ;;  %163 = vst.msk [vmem:[%s140_s24 + $0x58] sm:$0x3] %vm159_vm1, %v359_v3 }
  0x3a   : > { %155 = vst.msk [vmem:[%s140_s24 + $0x30] sm:$0xff] %vm150_vm0, %v146_v5  ;;  %156 = vst.msk [vmem:[%s140_s24 + $0x38] sm:$0xff] %vm150_vm0, %v147_v6 }
  0x3b   : > { %157 = vst.msk [vmem:[%s140_s24 + $0x48] sm:$0xff] %vm150_vm0, %v148_v7  ;;  %158 = vst.msk [vmem:[%s140_s24 + $0x50] sm:$0xff] %vm150_vm0, %v149_v8 }
  0x3c PF: > { %p11_p8 = scmp.ge.s32.totalorder %s390_s11, 4   ;;  %s489_s6 = smov %s346_s7 }
  0x3d   : > { %s490_s7 = smov %s350_s8  ;;  %s491_s8 = smov %s400_s14 }
  0x3e   : > { %s492_s9 = smov %s390_s11  ;;  %13 = sbr.rel (!%p11_p8) target bundleno = 3 (0x3), region = 64 }
  0x43   :  { %188 = vsyncpa [#allocation3], 1 }
  0x44   :  { %190 = vsyncpa [#allocation3 + $0x1], 1 }

</bundles_post_ra>
